<compile_context>
chip_gen: v7x
topology: tpu7x:2x2x1
jax: 0.10.0
libtpu: 0.0.40
codegen_flags: <defaults>
</compile_context>

<pallas_src>
import functools

import jax
import jax.numpy as jnp
from jax import lax
from jax.experimental import pallas as pl
from jax.experimental.pallas import tpu as pltpu


def _block_rows(n, f, itemsize, block_rows=None, target_bytes=2 << 20):
    """Rows per grid step (always a multiple of 128 so the batch can be
    re-laid out lane-dense as (rows//128, 128) inside the kernel)."""
    if block_rows is None:
        rows = max((target_bytes // max(f * itemsize, 1)) // 128 * 128, 128)
        rows = min(rows, 16 * 1024)          # cap keeps VMEM use tiny on v7x
    else:
        assert block_rows % 128 == 0 and block_rows >= 128, \
            "block_rows must be a multiple of 128"
        rows = block_rows
    # Never exceed the batch (rounded down to the 128 granule, floor at 128).
    rows = min(rows, max(n // 128 * 128, 128))
    return rows


# ----------------------------------------------------------------------------
# LogisticRegression.forward:  sigmoid(x @ W^T + b)   (standalone, row-tiled)
# ----------------------------------------------------------------------------
def _logreg_forward_kernel(x_ref, w_ref, b_ref, o_ref):
    x = x_ref[...].astype(jnp.float32)                      # (tn, F)
    w = w_ref[...].astype(jnp.float32)                      # (1,  F)
    # Width-1 output: VPU multiply + lane reduce (MXU would be ~idle).
    z = jnp.sum(x * w, axis=-1, keepdims=True) + b_ref[...]  # (tn, 1)
    # NOTE: (tn, 1) output is lane-sparse (masked stores); left as-is because
    # the fused loss path below never materialises this array (review item 8).
    o_ref[...] = jax.nn.sigmoid(z).astype(o_ref.dtype)


def logistic_regression_forward(x, weight, bias, *, block_rows=None):
    n, f = x.shape
    tn = _block_rows(n, f, x.dtype.itemsize, block_rows)
    if tn >= n:
        tn = n                                 # single full-extent block
    grid = (pl.cdiv(n, tn),)
    w2 = weight.reshape(1, f)
    b2 = jnp.asarray(bias, jnp.float32).reshape(1, 1)
    return pl.pallas_call(
        _logreg_forward_kernel,
        out_shape=jax.ShapeDtypeStruct((n, 1), jnp.float32),
        grid_spec=pltpu.PrefetchScalarGridSpec(
            num_scalar_prefetch=0,
            grid=grid,
            in_specs=[
                pl.BlockSpec((tn, f), lambda i: (i, 0)),    # x row tile
                pl.BlockSpec((1, f), lambda i: (0, 0)),     # weight (tiny)
                pl.BlockSpec((1, 1), lambda i: (0, 0)),     # bias
            ],
            out_specs=pl.BlockSpec((tn, 1), lambda i: (i, 0)),
        ),
        compiler_params=pltpu.CompilerParams(
            dimension_semantics=("parallel",)),
    )(x, w2, b2)


# ----------------------------------------------------------------------------
# Fused LogisticRegression.forward + BCE partial sums.
#   Per grid step: z = x.w + b  (lane-dense),  per-elem clamped BCE,  running
#   per-core sum.  The mean and the elastic-net penalty are applied in the
#   wrapper on the (num_cores,) partial sums.
# ----------------------------------------------------------------------------
def _elastic_net_bce_sum_kernel(x_ref, t_ref, w_ref, b_ref, psum_ref, *,
                                steps_per_core, full_blocks, block_rows,
                                total_n, any_partial):
    p = pl.program_id(0)                       # parallel (core) axis
    s = pl.program_id(1)                       # arbitrary (reduction) axis
    blk = p * steps_per_core + s               # logical row-block index

    @pl.when(s == 0)
    def _init():
        psum_ref[...] = jnp.zeros_like(psum_ref)

    rows, f = x_ref.shape
    r = rows // 128

    # Free reshape (leading dims only, last dim unchanged): batch rows now
    # live on the 128-lane axis for the whole BCE chain.
    x = x_ref[...].astype(jnp.float32).reshape(r, 128, f)
    w = w_ref[...].astype(jnp.float32).reshape(1, 1, f)
    t = t_ref[0].astype(jnp.float32)           # (r, 128) lane-dense targets
    b = b_ref[...]                             # (1, 1) f32

    # Logits: width-1 output => VPU multiply + lane reduce, no MXU/transpose.
    z = jnp.sum(x * w, axis=-1) + b            # (r, 128)

    # PyTorch parity: Sigmoid -> BCELoss with log terms clamped at -100.
    o = jax.nn.sigmoid(z)
    log_o = jnp.maximum(jnp.log(o), -100.0)
    log_1mo = jnp.maximum(jnp.log(1.0 - o), -100.0)
    per = -(t * log_o + (1.0 - t) * log_1mo)   # (r, 128)

    if not any_partial:
        # Static fast path: every tile is full and every grid step maps to a
        # distinct tile -> no iota/select in the hot loop at all.
        psum_ref[...] += jnp.sum(per)
    else:
        @pl.when(blk < full_blocks)
        def _acc_full():                        # hot path, unmasked
            psum_ref[...] += jnp.sum(per)

        @pl.when(blk >= full_blocks)
        def _acc_masked():                      # ragged / duplicated tiles
            row = (blk * block_rows
                   + lax.broadcasted_iota(jnp.int32, per.shape, 0) * 128
                   + lax.broadcasted_iota(jnp.int32, per.shape, 1))
            psum_ref[...] += jnp.sum(jnp.where(row < total_n, per, 0.0))


def elastic_net_loss(x, targets, weight, bias, *, alpha=1.0, l1_ratio=0.5,
                     block_rows=None):
    n, f = x.shape
    tn = _block_rows(n, f, x.dtype.itemsize, block_rows)
    if n < tn:                                  # only possible when n < 128
        x = jnp.pad(x, ((0, tn - n), (0, 0)))   # padded rows are masked out

    n_blocks = pl.cdiv(n, tn)
    full_blocks = n // tn
    num_cores = 2 if n_blocks >= 2 else 1       # v7x: 2 TCs; no-op on v5e/v6e
    spp = pl.cdiv(n_blocks, num_cores)          # reduction steps per core
    r = tn // 128

    # Targets: pad (cheap, N elements) and present lane-dense as
    # (n_blocks, tn//128, 128) so the per-element BCE is lane-dense end-to-end.
    t = targets.reshape(-1)
    assert t.shape[0] == n, "targets must have one entry per row of x"
    t = jnp.pad(t, (0, n_blocks * tn - n)).reshape(n_blocks, r, 128)

    w2 = weight.reshape(1, f)
    b2 = jnp.asarray(bias, jnp.float32).reshape(1, 1)

    # Row-block index for a (core, step) grid point; clamp only when the grid
    # over-covers the block count (duplicated steps get fully masked above).
    if num_cores * spp == n_blocks:
        row_block = lambda p, s: p * spp + s
    else:
        row_block = lambda p, s: jnp.minimum(p * spp + s, n_blocks - 1)

    kernel = functools.partial(
        _elastic_net_bce_sum_kernel,
        steps_per_core=spp, full_blocks=full_blocks, block_rows=tn,
        total_n=n,
        any_partial=(n % tn != 0) or (num_cores * spp != n_blocks))

    # VMEM budget (double-buffered): 2*(tn*F*itemsize) + 2*(tn*t_itemsize)
    # ~ 4-5 MiB at the default tile target -> fits every generation's scoped
    # default, so no vmem_limit_bytes override is required.
    partials = pl.pallas_call(
        kernel,
        out_shape=jax.ShapeDtypeStruct((num_cores, 1, 1), jnp.float32),
        grid_spec=pltpu.PrefetchScalarGridSpec(
            num_scalar_prefetch=0,
            grid=(num_cores, spp),
            in_specs=[
                pl.BlockSpec((tn, f), lambda p, s: (row_block(p, s), 0)),
                pl.BlockSpec((1, r, 128),
                             lambda p, s: (row_block(p, s), 0, 0)),
                pl.BlockSpec((1, f), lambda p, s: (0, 0)),
                pl.BlockSpec((1, 1), lambda p, s: (0, 0)),
            ],
            out_specs=pl.BlockSpec((1, 1, 1), lambda p, s: (p, 0, 0)),
        ),
        compiler_params=pltpu.CompilerParams(
            dimension_semantics=("parallel", "arbitrary")),
    )(x, t, w2, b2)

    # Finalize outside the kernel (tiny O(F) work): mean + elastic-net penalty
    # over the model parameters (weight, bias), exactly as the torch module.
    wf = weight.astype(jnp.float32)
    bf = jnp.asarray(bias, jnp.float32)
    bce = jnp.sum(partials) / jnp.float32(n)
    l1 = jnp.sum(jnp.abs(wf)) + jnp.sum(jnp.abs(bf))
    l2 = jnp.sum(wf * wf) + jnp.sum(bf * bf)
    return bce + alpha * (l1_ratio * l1 + (1.0 - l1_ratio) * l2)


# ----------------------------------------------------------------------------
# Pure-JAX references (computed from the raw inputs).
# ----------------------------------------------------------------------------
def _ref_forward(x, weight, bias):
    xf = x.astype(jnp.float32)
    wf = weight.astype(jnp.float32).reshape(1, -1)
    bf = jnp.asarray(bias, jnp.float32).reshape(1, 1)
    return jax.nn.sigmoid(jnp.sum(xf * wf, axis=-1, keepdims=True) + bf)


def _ref_loss(x, targets, weight, bias, alpha=1.0, l1_ratio=0.5):
    o = _ref_forward(x, weight, bias)
    t = targets.reshape(-1, 1).astype(jnp.float32)
    bce = -jnp.mean(t * jnp.maximum(jnp.log(o), -100.0)
                    + (1.0 - t) * jnp.maximum(jnp.log(1.0 - o), -100.0))
    l1 = jnp.sum(jnp.abs(weight)) + jnp.sum(jnp.abs(bias))
    l2 = jnp.sum(weight ** 2) + jnp.sum(bias ** 2)
    return bce + alpha * (l1_ratio * l1 + (1.0 - l1_ratio) * l2)


if __name__ == "__main__":
    key = jax.random.PRNGKey(0)
    k_x, k_t, k_w, k_b = jax.random.split(key, 4)

    N = 200        # batch; not a multiple of the tile -> exercises masking
    F = 32         # PCA n_components (feature dim)
    BLOCK = 128    # small override so the demo exercises the 2-D grid + mask

    x = jax.random.normal(k_x, (N, F), dtype=jnp.float32)
    targets = jax.random.bernoulli(k_t, 0.5, (N, 1)).astype(jnp.float32)

    # nn.Linear(F, 1)-style parameters (uniform +-1/sqrt(F)).
    bound = 1.0 / jnp.sqrt(jnp.float32(F))
    weight = jax.random.uniform(k_w, (1, F), jnp.float32, -bound, bound)
    bias = jax.random.uniform(k_b, (1,), jnp.float32, -bound, bound)

    # Standalone LogisticRegression.forward (module parity).
    out = jax.block_until_ready(
        logistic_regression_forward(x, weight, bias, block_rows=BLOCK))
    assert jnp.allclose(out, _ref_forward(x, weight, bias),
                        rtol=1e-5, atol=1e-6), "forward mismatch"

    # Fused forward + ElasticNetLoss (f32 inputs).
    loss = jax.block_until_ready(
        elastic_net_loss(x, targets, weight, bias, alpha=1.0, l1_ratio=0.5,
                         block_rows=BLOCK))
    ref = _ref_loss(x, targets, weight, bias, 1.0, 0.5)
    assert jnp.allclose(loss, ref, rtol=1e-5, atol=1e-5), (loss, ref)

    # bf16 activations: halves HBM traffic; in-kernel math stays f32.
    x16 = x.astype(jnp.bfloat16)
    t16 = targets.astype(jnp.bfloat16)
    loss16 = jax.block_until_ready(
        elastic_net_loss(x16, t16, weight, bias, alpha=1.0, l1_ratio=0.5,
                         block_rows=BLOCK))
    ref16 = _ref_loss(x16, t16, weight, bias, 1.0, 0.5)
    assert jnp.allclose(loss16, ref16, rtol=1e-4, atol=1e-4), (loss16, ref16)

    # Default (bytes-derived) tile path, no override.
    loss_d = jax.block_until_ready(
        elastic_net_loss(x, targets, weight, bias, alpha=1.0, l1_ratio=0.5))
    assert jnp.allclose(loss_d, ref, rtol=1e-5, atol=1e-5), (loss_d, ref)

    print("KERNEL_OK")
</pallas_src>

<mosaic_0001>
module attributes {stable_mosaic.version = 11 : i64} {
  func.func @_logreg_forward_kernel(%arg0: i32, %arg1: memref<128x32xf32, #tpu.memory_space<vmem>>, %arg2: memref<1x32xf32, #tpu.memory_space<vmem>>, %arg3: memref<1x1xf32, #tpu.memory_space<vmem>>, %arg4: memref<128x1xf32, #tpu.memory_space<vmem>>) attributes {dimension_semantics = [#tpu.dimension_semantics<parallel>], iteration_bounds = array<i64: 2>, scalar_prefetch = 0 : i64, scratch_operands = 0 : i64, tpu.core_type = #tpu.core_type<tc>, window_params = [{transform_indices = @transform_0, window_bounds = array<i64: 128, 32>}, {pipeline_mode = #tpu.pipeline_mode<synchronous>, transform_indices = @transform_1, window_bounds = array<i64: 1, 32>}, {pipeline_mode = #tpu.pipeline_mode<synchronous>, transform_indices = @transform_2, window_bounds = array<i64: 1, 1>}, {transform_indices = @transform_3, window_bounds = array<i64: 128, 1>}]} {
    %c0 = arith.constant 0 : index
    %c0_0 = arith.constant 0 : index
    %0 = vector.load %arg1[%c0, %c0_0] : memref<128x32xf32, #tpu.memory_space<vmem>>, vector<128x32xf32>
    %c0_1 = arith.constant 0 : index
    %c0_2 = arith.constant 0 : index
    %1 = vector.load %arg2[%c0_1, %c0_2] : memref<1x32xf32, #tpu.memory_space<vmem>>, vector<1x32xf32>
    %2 = vector.broadcast %1 : vector<1x32xf32> to vector<128x32xf32>
    %3 = arith.mulf %0, %2 : vector<128x32xf32>
    %cst = arith.constant dense<0.000000e+00> : vector<128xf32>
    %4 = vector.multi_reduction <add>, %3, %cst [1] : vector<128x32xf32> to vector<128xf32>
    %5 = vector.shape_cast %4 : vector<128xf32> to vector<128x1xf32>
    %c0_3 = arith.constant 0 : index
    %c0_4 = arith.constant 0 : index
    %6 = vector.load %arg3[%c0_3, %c0_4] : memref<1x1xf32, #tpu.memory_space<vmem>>, vector<1x1xf32>
    %7 = vector.broadcast %6 : vector<1x1xf32> to vector<128x1xf32>
    %8 = arith.addf %5, %7 : vector<128x1xf32>
    %9 = arith.negf %8 : vector<128x1xf32>
    %10 = math.exp %9 : vector<128x1xf32>
    %cst_5 = arith.constant 1.000000e+00 : f32
    %11 = vector.broadcast %cst_5 : f32 to vector<128x1xf32>
    %12 = arith.addf %11, %10 : vector<128x1xf32>
    %13 = arith.divf %11, %12 : vector<128x1xf32>
    %c0_6 = arith.constant 0 : index
    %c0_7 = arith.constant 0 : index
    %14 = vector.load %arg4[%c0_6, %c0_7] : memref<128x1xf32, #tpu.memory_space<vmem>>, vector<128x1xf32>
    tpu.vector_store %arg4[%c0_6, %c0_7], %13 {strides = array<i32>} : memref<128x1xf32, #tpu.memory_space<vmem>>, vector<128x1xf32>,
    return
  }
  func.func @transform_0(%arg0: i32) -> (i32, i32) {
    %c0_i32 = arith.constant 0 : i32
    %c0_i32_0 = arith.constant 0 : i32
    return %arg0, %c0_i32 : i32, i32
  }
  func.func @transform_1(%arg0: i32) -> (i32, i32) {
    %c0_i32 = arith.constant 0 : i32
    %c0_i32_0 = arith.constant 0 : i32
    %c0_i32_1 = arith.constant 0 : i32
    return %c0_i32, %c0_i32_0 : i32, i32
  }
  func.func @transform_2(%arg0: i32) -> (i32, i32) {
    %c0_i32 = arith.constant 0 : i32
    %c0_i32_0 = arith.constant 0 : i32
    %c0_i32_1 = arith.constant 0 : i32
    return %c0_i32, %c0_i32_0 : i32, i32
  }
  func.func @transform_3(%arg0: i32) -> (i32, i32) {
    %c0_i32 = arith.constant 0 : i32
    %c0_i32_0 = arith.constant 0 : i32
    return %arg0, %c0_i32 : i32, i32
  }
}

</mosaic_0001>

<bundles_post_ra>
// kernel: tpu_custom_call.1
= control target key start
LH: loop header
LB: loop body
LE: loop exit
PB: predicated region body
PF: predicated region fallthrough
CT: control target
= control target key end

     0   :  { %s1228_s0 = inlined_call_operand.vmem [shape: f32[200,32], index: 0, kind: input, shape index: {}]   ;;  %s1229_s1 = inlined_call_operand.vmem [shape: f32[1,32], index: 1, kind: input, shape index: {}]   ;;  %s1230_s2 = inlined_call_operand.<no memory space> [shape: f32[1,1], index: 2, kind: input, shape index: {}]   ;;  %s1231_s3 = inlined_call_operand.vmem [shape: f32[200,1], index: 3, kind: output, shape index: {}]  }
   0x1   :  { %v8_v0 = vstv %s1230_s2 }
   0x2   :  { %9 = vst [vmem:[#allocation2] sm:$0x1] %v8_v0 }
   0x3   :  { %s1001_s14 = smov 0   ;;  %s1003_s15 = smov 0  }
   0x4   :  { %s1005_s16 = smov 0  }
   0x5 LB: > { %s1014_s2 = sadd.s32 4294967295, %s944_s16   ;;  %s1016_s17 = sadd.s32 1, %s944_s16   ;;  %s944_s16 = sphi %s1005_s16, %s1238_s16   ;;  %s940_s15 = sphi %s1003_s15, %s1237_s15   ;;  %s936_s14 = sphi %s1001_s14, %s1236_s14  }
   0x6   : > { %s87_s18 = ssub.s32 %s944_s16, %s1016_s17  ;;  %s90_s19 = sadd.s32 1, %s940_s15 }
   0x7   : > { %p88_p0 = scmp.eq.s32.totalorder %s87_s18, 0  ;;  %p100_p1 = scmp.ne.s32.totalorder %s940_s15, %s936_s14 }
   0x8   : > { %p101_p2 = scmp.eq.s32.totalorder %s1014_s2, 1  ;;  %p696_p3 = scmp.ge.s32.totalorder %s944_s16, 1 }
   0x9   : > { %s1024_s20 = scalar_select %p88_p0, %s940_s15, %s90_s19  }
   0xa   : > { %p1026_p4 = por %p101_p2, %p100_p1  ;;  %p148_p5 = scmp.lt.s32.totalorder %s944_s16, 3 }
   0xc   : > { %p149_p6 = pnand %p696_p3, %p148_p5 }
   0xd   : > { %s1031_s22 = sshll.u32 (!%p149_p6), %s1014_s2, 4  ;;  %v700_v1 = vld [vmem:[%s1229_s1] ss:$0 sm:$0xff] (!%p149_p6)  ;;  %vm233_vm0 = vcmask (!%p149_p6), 261120   ;;  %s172_s30 = sand.u32 (!%p149_p6), 1, %s936_s14   ;;  %vm401_vm1 = vcmask (!%p149_p6), 7168  }
   0xe   : > { %152 = sbr.rel (%p149_p6) target bundleno = 280 (0x118), region = 32  ;;  %p180_p7 = scmp.lt.s32.totalorder (!%p149_p6), %s1031_s22, 24  ;;  %v1075_v50 = vld [vmem:[#allocation2] ss:$0 sm:$0xff] (!%p149_p6) }
   0xf   : > { %s697_s4 = sshll.u32 (!%p149_p6), %s172_s30, 7 }
  0x10   : > { %s1092_s5 = scalar_lea.vmem (!%p149_p6), [#allocation3], %s697_s4  }
  0x15   : > { %s181_s23 = scalar_select %p180_p7, %s1031_s22, 24 }
  0x16   : > { %s426_s6 = ssub.s32 (%p1026_p4), 25, %s1031_s22  ;;  %s735_s7 = sshll.u32 (%p1026_p4), %s1014_s2, 7 }
  0x17   : > { %s699_s24 = sshll.u32 %s181_s23, 3  ;;  %p427_p8 = scmp.lt.s32.totalorder (%p1026_p4), %s426_s6, 16 }
  0x18   : > { %s1041_s29 = scalar_lea.vmem %s1228_s0, %s699_s24  ;;  %s1135_s10 = scalar_lea.vmem (%p1026_p4), %s1231_s3, %s735_s7  }
  0x19   : > { %v196_v2 = vld [vmem:[%s1041_s29 + $0x10] sm:$0xff]  ;;  %v194_v3 = vld [vmem:[%s1041_s29] sm:$0xff]  ;;  %v197_v4 = vld [vmem:[%s1041_s29 + $0x18] sm:$0xff] }
  0x1a   : > { %v219_v5 = vmul.f32 %v700_v1, %v196_v2  ;;  %v217_v6 = vmul.f32 %v700_v1, %v194_v3  ;;  %v220_v7 = vmul.f32 %v700_v1, %v197_v4  ;;  %v195_v8 = vld [vmem:[%s1041_s29 + $0x8] sm:$0xff]  ;;  %v198_v11 = vld [vmem:[%s1041_s29 + $0x20] sm:$0xff]  ;;  %v201_v18 = vld [vmem:[%s1041_s29 + $0x38] sm:$0xff] }
  0x1b   : > { %v218_v9 = vmul.f32 %v700_v1, %v195_v8  ;;  %v199_v10 = vld [vmem:[%s1041_s29 + $0x28] sm:$0xff]  ;;  %v221_v17 = vmul.f32 %v700_v1, %v198_v11  ;;  %v200_v19 = vld [vmem:[%s1041_s29 + $0x30] sm:$0xff]  ;;  %v224_v22 = vmul.f32 %v700_v1, %v201_v18  ;;  %v202_v25 = vld [vmem:[%s1041_s29 + $0x40] sm:$0xff] }
  0x1c   : > { %v240_v12 = vsel %vm233_vm0, %v219_v5, 0.0  ;;  %v234_v13 = vsel %vm233_vm0, %v217_v6, 0.0  ;;  %v243_v14 = vsel %vm233_vm0, %v220_v7, 0.0  ;;  %v222_v16 = vmul.f32 %v700_v1, %v199_v10  ;;  %v203_v24 = vld [vmem:[%s1041_s29 + $0x48] sm:$0xff]  ;;  %v205_v30 = vld [vmem:[%s1041_s29 + $0x58] sm:$0xff]  ;;  %v204_v31 = vld [vmem:[%s1041_s29 + $0x50] sm:$0xff] }
  0x1d   : > { %241 = vadd.xlane.f32.xlu1 %v240_v12  ;;  %235 = vadd.xlane.f32.xlu0 %v234_v13  ;;  %v237_v15 = vsel %vm233_vm0, %v218_v9, 0.0  ;;  %v246_v21 = vsel %vm233_vm0, %v221_v17, 0.0  ;;  %v223_v23 = vmul.f32 %v700_v1, %v200_v19  ;;  %v255_v26 = vsel %vm233_vm0, %v224_v22, 0.0  ;;  %v207_v36 = vld [vmem:[%s1041_s29 + $0x68] sm:$0xff]  ;;  %v206_v37 = vld [vmem:[%s1041_s29 + $0x60] sm:$0xff]  ;;  %v209_v42 = vld [vmem:[%s1041_s29 + $0x78] sm:$0xff] }
  0x1e   : > { %v249_v20 = vsel %vm233_vm0, %v222_v16, 0.0  ;;  %v226_v28 = vmul.f32 %v700_v1, %v203_v24  ;;  %v225_v29 = vmul.f32 %v700_v1, %v202_v25  ;;  %v228_v34 = vmul.f32 %v700_v1, %v205_v30  ;;  %v208_v43 = vld [vmem:[%s1041_s29 + $0x70] sm:$0xff] }
  0x1f   : > { %v252_v27 = vsel %vm233_vm0, %v223_v23, 0.0  ;;  %v227_v35 = vmul.f32 %v700_v1, %v204_v31  ;;  %v230_v40 = vmul.f32 %v700_v1, %v207_v36  ;;  %v229_v41 = vmul.f32 %v700_v1, %v206_v37 }
  0x20   : > { %v261_v32 = vsel %vm233_vm0, %v226_v28, 0.0  ;;  %v258_v33 = vsel %vm233_vm0, %v225_v29, 0.0  ;;  %v267_v38 = vsel %vm233_vm0, %v228_v34, 0.0  ;;  %v232_v46 = vmul.f32 %v700_v1, %v209_v42 }
  0x21   : > { %244 = vadd.xlane.f32.xlu1 %v243_v14  ;;  %238 = vadd.xlane.f32.xlu0 %v237_v15  ;;  %v264_v39 = vsel %vm233_vm0, %v227_v35, 0.0  ;;  %v273_v44 = vsel %vm233_vm0, %v230_v40, 0.0  ;;  %v270_v45 = vsel %vm233_vm0, %v229_v41, 0.0  ;;  %v231_v47 = vmul.f32 %v700_v1, %v208_v43 }
  0x22   : > { %v279_v48 = vsel %vm233_vm0, %v232_v46, 0.0 }
  0x23   : > { %v276_v49 = vsel %vm233_vm0, %v231_v47, 0.0 }
  0x25   : > { %250 = vadd.xlane.f32.xlu1 %v249_v20  ;;  %247 = vadd.xlane.f32.xlu0 %v246_v21 }
  0x29   : > { %256 = vadd.xlane.f32.xlu1 %v255_v26  ;;  %253 = vadd.xlane.f32.xlu0 %v252_v27 }
  0x2d   : > { %262 = vadd.xlane.f32.xlu1 %v261_v32  ;;  %259 = vadd.xlane.f32.xlu0 %v258_v33 }
  0x31   : > { %268 = vadd.xlane.f32.xlu1 %v267_v38  ;;  %265 = vadd.xlane.f32.xlu0 %v264_v39 }
  0x35   : > { %274 = vadd.xlane.f32.xlu1 %v273_v44  ;;  %271 = vadd.xlane.f32.xlu0 %v270_v45 }
  0x39   : > { %280 = vadd.xlane.f32.xlu1 %v279_v48  ;;  %277 = vadd.xlane.f32.xlu0 %v276_v49 }
  0xaa   : > { %v242_v51 = vpop.xlane.xlu1 %241  ;;  %v236_v52 = vpop.xlane.xlu0 %235 }
  0xab   : > { %v291_v53 = vadd.f32 %v1075_v50, %v242_v51  ;;  %v289_v54 = vadd.f32 %v1075_v50, %v236_v52 }
  0xad   : > { %v704_v55 = vmul.f32 -1.442695, %v291_v53  ;;  %v702_v56 = vmul.f32 -1.442695, %v289_v54 }
  0xae   : > { %v245_v57 = vpop.xlane.xlu1 %244  ;;  %v239_v58 = vpop.xlane.xlu0 %238 }
  0xaf   : > { %826 = vpow2.f32 %v704_v55  ;;  %v292_v59 = vadd.f32 %v1075_v50, %v245_v57  ;;  %v290_v60 = vadd.f32 %v1075_v50, %v239_v58 }
  0xb0   : > { %828 = vpow2.f32 %v702_v56 }
  0xb1   : > { %v705_v61 = vmul.f32 -1.442695, %v292_v59  ;;  %v703_v62 = vmul.f32 -1.442695, %v290_v60 }
  0xb2   : > { %v251_v63 = vpop.xlane.xlu1 %250  ;;  %v248_v0 = vpop.xlane.xlu0 %247 }
  0xb3   : > { %830 = vpow2.f32 %v705_v61  ;;  %v294_v1 = vadd.f32 %v1075_v50, %v251_v63  ;;  %v293_v2 = vadd.f32 %v1075_v50, %v248_v0 }
  0xb4   : > { %832 = vpow2.f32 %v703_v62 }
  0xb5   : > { %v707_v3 = vmul.f32 -1.442695, %v294_v1  ;;  %v706_v4 = vmul.f32 -1.442695, %v293_v2 }
  0xb6   : > { %v257_v5 = vpop.xlane.xlu1 %256  ;;  %v254_v6 = vpop.xlane.xlu0 %253 }
  0xb7   : > { %834 = vpow2.f32 %v707_v3  ;;  %v296_v7 = vadd.f32 %v1075_v50, %v257_v5  ;;  %v295_v8 = vadd.f32 %v1075_v50, %v254_v6 }
  0xb8   : > { %836 = vpow2.f32 %v706_v4 }
  0xb9   : > { %v827_v9 = vpop.eup %826  ;;  %v709_v10 = vmul.f32 -1.442695, %v296_v7  ;;  %v708_v13 = vmul.f32 -1.442695, %v295_v8 }
  0xba   : > { %v829_v11 = vpop.eup %828  ;;  %v355_v12 = vadd.f32 1.0, %v827_v9  ;;  %v263_v14 = vpop.xlane.xlu1 %262 }
  0xbb   : > { %v260_v15 = vpop.xlane.xlu0 %259  ;;  %v353_v16 = vadd.f32 1.0, %v829_v11  ;;  %838 = vpow2.f32 %v709_v10  ;;  %v298_v17 = vadd.f32 %v1075_v50, %v263_v14 }
  0xbc   : > { %v297_v18 = vadd.f32 %v1075_v50, %v260_v15  ;;  %840 = vrcp.f32 %v355_v12 }
  0xbd   : > { %v831_v19 = vpop.eup %830  ;;  %842 = vrcp.f32 %v353_v16  ;;  %v711_v20 = vmul.f32 -1.442695, %v298_v17 }
  0xbe   : > { %v833_v21 = vpop.eup %832  ;;  %v356_v22 = vadd.f32 1.0, %v831_v19  ;;  %844 = vpow2.f32 %v708_v13  ;;  %v710_v23 = vmul.f32 -1.442695, %v297_v18  ;;  %v269_v24 = vpop.xlane.xlu1 %268 }
  0xbf   : > { %v266_v25 = vpop.xlane.xlu0 %265  ;;  %v354_v26 = vadd.f32 1.0, %v833_v21  ;;  %846 = vpow2.f32 %v711_v20  ;;  %v300_v27 = vadd.f32 %v1075_v50, %v269_v24 }
  0xc0   : > { %v299_v28 = vadd.f32 %v1075_v50, %v266_v25  ;;  %848 = vrcp.f32 %v356_v22 }
  0xc1   : > { %v835_v29 = vpop.eup %834  ;;  %850 = vrcp.f32 %v354_v26  ;;  %v713_v30 = vmul.f32 -1.442695, %v300_v27 }
  0xc2   : > { %v837_v31 = vpop.eup %836  ;;  %v358_v32 = vadd.f32 1.0, %v835_v29  ;;  %852 = vpow2.f32 %v710_v23  ;;  %v712_v33 = vmul.f32 -1.442695, %v299_v28  ;;  %v275_v34 = vpop.xlane.xlu1 %274 }
  0xc3   : > { %v272_v35 = vpop.xlane.xlu0 %271  ;;  %v357_v36 = vadd.f32 1.0, %v837_v31  ;;  %854 = vpow2.f32 %v713_v30  ;;  %v302_v37 = vadd.f32 %v1075_v50, %v275_v34 }
  0xc4   : > { %v301_v38 = vadd.f32 %v1075_v50, %v272_v35  ;;  %856 = vrcp.f32 %v358_v32 }
  0xc5   : > { %v839_v39 = vpop.eup %838  ;;  %858 = vrcp.f32 %v357_v36  ;;  %v715_v40 = vmul.f32 -1.442695, %v302_v37 }
  0xc6   : > { %v714_v41 = vmul.f32 -1.442695, %v301_v38  ;;  %v841_v42 = vpop.eup %840  ;;  %v360_v43 = vadd.f32 1.0, %v839_v39  ;;  %860 = vpow2.f32 %v712_v33  ;;  %v281_v44 = vpop.xlane.xlu1 %280 }
  0xc7   : > { %v278_v45 = vpop.xlane.xlu0 %277  ;;  %v843_v46 = vpop.eup %842  ;;  %404 = vst.msk [vmem:[%s1092_s5 + $0x10] sm:$0xff] %vm401_vm1, %v841_v42  ;;  %862 = vpow2.f32 %v715_v40  ;;  %v304_v47 = vadd.f32 %v1075_v50, %v281_v44 }
  0xc8   : > { %v303_v48 = vadd.f32 %v1075_v50, %v278_v45  ;;  %v845_v49 = vpop.eup %844  ;;  %402 = vst.msk [vmem:[%s1092_s5] sm:$0xff] %vm401_vm1, %v843_v46  ;;  %864 = vrcp.f32 %v360_v43 }
  0xc9   : > { %v847_v51 = vpop.eup %846  ;;  %v359_v52 = vadd.f32 1.0, %v845_v49  ;;  %866 = vpow2.f32 %v714_v41  ;;  %v717_v53 = vmul.f32 -1.442695, %v304_v47 }
  0xca   : > { %v849_v54 = vpop.eup %848  ;;  %v362_v55 = vadd.f32 1.0, %v847_v51  ;;  %v716_v56 = vmul.f32 -1.442695, %v303_v48 }
  0xcb   : > { %v851_v57 = vpop.eup %850  ;;  %405 = vst.msk [vmem:[%s1092_s5 + $0x18] sm:$0xff] %vm401_vm1, %v849_v54  ;;  %868 = vrcp.f32 %v359_v52 }
  0xcc   : > { %v853_v58 = vpop.eup %852  ;;  %403 = vst.msk [vmem:[%s1092_s5 + $0x8] sm:$0xff] %vm401_vm1, %v851_v57  ;;  %870 = vrcp.f32 %v362_v55 }
  0xcd   : > { %v855_v50 = vpop.eup %854  ;;  %v361_v59 = vadd.f32 1.0, %v853_v58  ;;  %872 = vpow2.f32 %v717_v53 }
  0xce   : > { %v857_v60 = vpop.eup %856  ;;  %v364_v61 = vadd.f32 1.0, %v855_v50  ;;  %874 = vpow2.f32 %v716_v56 }
  0xcf   : > { %v859_v62 = vpop.eup %858  ;;  %407 = vst.msk [vmem:[%s1092_s5 + $0x28] sm:$0xff] %vm401_vm1, %v857_v60  ;;  %876 = vrcp.f32 %v361_v59 }
  0xd0   : > { %v861_v63 = vpop.eup %860  ;;  %406 = vst.msk [vmem:[%s1092_s5 + $0x20] sm:$0xff] %vm401_vm1, %v859_v62  ;;  %878 = vrcp.f32 %v364_v61 }
  0xd1   : > { %v863_v0 = vpop.eup %862  ;;  %v363_v1 = vadd.f32 1.0, %v861_v63 }
  0xd2   : > { %v865_v2 = vpop.eup %864  ;;  %v366_v3 = vadd.f32 1.0, %v863_v0 }
  0xd3   : > { %v867_v4 = vpop.eup %866  ;;  %409 = vst.msk [vmem:[%s1092_s5 + $0x38] sm:$0xff] %vm401_vm1, %v865_v2  ;;  %880 = vrcp.f32 %v363_v1 }
  0xd4   : > { %882 = vrcp.f32 %v366_v3  ;;  %v365_v5 = vadd.f32 1.0, %v867_v4 }
  0xd5   : > { %v869_v6 = vpop.eup %868 }
  0xd6   : > { %v871_v7 = vpop.eup %870  ;;  %408 = vst.msk [vmem:[%s1092_s5 + $0x30] sm:$0xff] %vm401_vm1, %v869_v6  ;;  %884 = vrcp.f32 %v365_v5 }
  0xd7   : > { %v873_v8 = vpop.eup %872  ;;  %411 = vst.msk [vmem:[%s1092_s5 + $0x48] sm:$0xff] %vm401_vm1, %v871_v7 }
  0xd8   : > { %v875_v9 = vpop.eup %874  ;;  %v368_v10 = vadd.f32 1.0, %v873_v8 }
  0xd9   : > { %v877_v11 = vpop.eup %876  ;;  %v367_v12 = vadd.f32 1.0, %v875_v9 }
  0xda   : > { %v879_v13 = vpop.eup %878  ;;  %410 = vst.msk [vmem:[%s1092_s5 + $0x40] sm:$0xff] %vm401_vm1, %v877_v11  ;;  %886 = vrcp.f32 %v368_v10 }
  0xdb   : > { %413 = vst.msk [vmem:[%s1092_s5 + $0x58] sm:$0xff] %vm401_vm1, %v879_v13  ;;  %888 = vrcp.f32 %v367_v12 }
  0xdd   : > { %v881_v14 = vpop.eup %880 }
  0xde   : > { %v883_v15 = vpop.eup %882  ;;  %412 = vst.msk [vmem:[%s1092_s5 + $0x50] sm:$0xff] %vm401_vm1, %v881_v14 }
  0xdf   : > { %415 = vst.msk [vmem:[%s1092_s5 + $0x68] sm:$0xff] %vm401_vm1, %v883_v15 }
  0xe0   : > { %v885_v16 = vpop.eup %884  ;;  %424 = sbr.rel (!%p1026_p4) target bundleno = 280 (0x118), region = 36 }
  0xe1   : > { %414 = vst.msk [vmem:[%s1092_s5 + $0x60] sm:$0xff] %vm401_vm1, %v885_v16 }
  0xe4   : > { %v887_v17 = vpop.eup %886 }
  0xe5   : > { %v889_v18 = vpop.eup %888  ;;  %417 = vst.msk [vmem:[%s1092_s5 + $0x78] sm:$0xff] %vm401_vm1, %v887_v17 }
  0xe6   : > { %416 = vst.msk [vmem:[%s1092_s5 + $0x70] sm:$0xff] %vm401_vm1, %v889_v18 }
  0xe7   : > { %s1240_s6 = smov (!%p427_p8, %s426_s6), 16 }
  0xe8   : > { %s720_s11 = sshll.u32 %s1240_s6, 7 }
  0xe9   : > { %p723_p9 = scmp.eq.s32.totalorder %s720_s11, 0 }
  0xea   : > { %s1141_s12 = sshrl.u32 (!%p723_p9), %s1240_s6, 4 }
  0xeb   : > { %435 = sbr.rel (%p723_p9) target bundleno = 280 (0x118), region = 40  ;;  %p724_p10 = scmp.le.s32.totalorder (!%p723_p9), %s1141_s12, 0 }
  0xf2   : > { %649 = sbr.rel (%p724_p10) target bundleno = 259 (0x103), region = 116  ;;  %s1233_s13 = smov (!%p724_p10), %s1135_s10 }
  0xf3   : > { %s1234_s14 = smov (!%p724_p10), %s1092_s5  ;;  %s1150_s16 = smov (!%p724_p10), 0  }
  0xf4   : > { %s1152_s2 = smov (!%p724_p10), 0  }
  0xf9 LB: >> { %v527_v19 = vld [vmem:[%s952_s14] sm:$0xff]  ;;  %v529_v20 = vld [vmem:[%s952_s14 + $0x8] sm:$0xff]  ;;  %v531_v21 = vld [vmem:[%s952_s14 + $0x10] sm:$0xff]  ;;  %s559_s18 = sadd.s32 1, %s956_s16  ;;  %s521_s2 = sadd.s32 1, %s960_s2   ;;  %s960_s2 = sphi %s1152_s2, %s521_s2   ;;  %s956_s16 = sphi %s1150_s16, %s1235_s16   ;;  %s952_s14 = sphi %s1234_s14, %s564_s14   ;;  %s948_s13 = sphi %s1233_s13, %s565_s13  }
  0xfa   : >> { %528 = vst [vmem:[%s948_s13] sm:$0xff] %v527_v19  ;;  %530 = vst [vmem:[%s948_s13 + $0x8] sm:$0xff] %v529_v20  ;;  %v533_v22 = vld [vmem:[%s952_s14 + $0x18] sm:$0xff]  ;;  %v535_v23 = vld [vmem:[%s952_s14 + $0x20] sm:$0xff]  ;;  %p560_p11 = scmp.ge.s32.totalorder %s559_s18, %s1141_s12  ;;  %p520_p12 = scmp.ge.s32.totalorder %s521_s2, %s1141_s12 }
  0xfb   : >> { %532 = vst [vmem:[%s948_s13 + $0x10] sm:$0xff] %v531_v21  ;;  %v537_v24 = vld [vmem:[%s952_s14 + $0x28] sm:$0xff]  ;;  %534 = vst [vmem:[%s948_s13 + $0x18] sm:$0xff] %v533_v22  ;;  %v539_v25 = vld [vmem:[%s952_s14 + $0x30] sm:$0xff] }
  0xfc   : >> { %536 = vst [vmem:[%s948_s13 + $0x20] sm:$0xff] %v535_v23  ;;  %538 = vst [vmem:[%s948_s13 + $0x28] sm:$0xff] %v537_v24  ;;  %v541_v26 = vld [vmem:[%s952_s14 + $0x38] sm:$0xff]  ;;  %v543_v27 = vld [vmem:[%s952_s14 + $0x40] sm:$0xff]  ;;  %s1242_s18 = smov (%p560_p11, %s559_s18), 0  ;;  %523 = sbr.rel (!%p520_p12) target bundleno = 249 (0xf9), region = 122 }
  0xfd   : >> { %540 = vst [vmem:[%s948_s13 + $0x30] sm:$0xff] %v539_v25  ;;  %542 = vst [vmem:[%s948_s13 + $0x38] sm:$0xff] %v541_v26  ;;  %v545_v28 = vld [vmem:[%s952_s14 + $0x48] sm:$0xff]  ;;  %v547_v29 = vld [vmem:[%s952_s14 + $0x50] sm:$0xff]  ;;  %s725_s19 = sshll.u32 %s1242_s18, 7  ;;  %s1235_s16 = smov %s1242_s18 }
  0xfe   : >> { %544 = vst [vmem:[%s948_s13 + $0x40] sm:$0xff] %v543_v27  ;;  %v549_v30 = vld [vmem:[%s952_s14 + $0x58] sm:$0xff]  ;;  %546 = vst [vmem:[%s948_s13 + $0x48] sm:$0xff] %v545_v28  ;;  %v551_v31 = vld [vmem:[%s952_s14 + $0x60] sm:$0xff] }
  0xff   : >> { %548 = vst [vmem:[%s948_s13 + $0x50] sm:$0xff] %v547_v29  ;;  %550 = vst [vmem:[%s948_s13 + $0x58] sm:$0xff] %v549_v30  ;;  %v553_v32 = vld [vmem:[%s952_s14 + $0x68] sm:$0xff]  ;;  %v555_v33 = vld [vmem:[%s952_s14 + $0x70] sm:$0xff] }
 0x100   : >> { %552 = vst [vmem:[%s948_s13 + $0x60] sm:$0xff] %v551_v31  ;;  %554 = vst [vmem:[%s948_s13 + $0x68] sm:$0xff] %v553_v32  ;;  %v557_v34 = vld [vmem:[%s952_s14 + $0x78] sm:$0xff]  ;;  %s564_s14 = scalar_lea.vmem %s1092_s5, %s725_s19 [#allocation3]  }
 0x101   : >> { %556 = vst [vmem:[%s948_s13 + $0x70] sm:$0xff] %v555_v33  ;;  %558 = vst [vmem:[%s948_s13 + $0x78] sm:$0xff] %v557_v34  ;;  %s565_s13 = scalar_lea.vmem %s1135_s10, %s725_s19  }
 0x103 PF: > { %s1210_s21 = sand.u32 15, %s1240_s6   ;;  %s736_s22 = sshll.u32 %s1141_s12, 7 }
 0x104   : > { %s570_s23 = scalar_lea.vmem %s1092_s5, %s736_s22 [#allocation3]   ;;  %s572_s24 = scalar_lea.vmem %s1135_s10, %s736_s22  }
 0x105   : > { %p730_p13 = scmp.le.s32.totalorder %s1210_s21, 0 }
 0x106   : > { %s962_s25 = smov (!%p730_p13), %s572_s24   ;;  %s966_s26 = smov (!%p730_p13), %s570_s23  }
 0x107   : > { %663 = sbr.rel (%p730_p13) target bundleno = 280 (0x118), region = 127  ;;  %s970_s27 = smov (!%p730_p13), 0  }
 0x108   : > { %s974_s28 = smov (!%p730_p13), 0  }
 0x10e LB: >> { %v582_v35 = vld [vmem:[%s968_s26] sm:$0xff]  ;;  %s584_s29 = sadd.s32 1, %s972_s27  ;;  %s576_s28 = sadd.s32 1, %s976_s28   ;;  %s976_s28 = sphi %s974_s28, %s576_s28   ;;  %s972_s27 = sphi %s970_s27, %s971_s27   ;;  %s968_s26 = sphi %s966_s26, %s589_s26   ;;  %s964_s25 = sphi %s962_s25, %s590_s25  }
 0x10f   : >> { %583 = vst [vmem:[%s964_s25] sm:$0xff] %v582_v35  ;;  %p585_p0 = scmp.ge.s32.totalorder %s584_s29, %s1210_s21  ;;  %p575_p1 = scmp.ge.s32.totalorder %s576_s28, %s1210_s21 }
 0x111   : >> { %s1244_s29 = smov (%p585_p0, %s584_s29), 0  ;;  %578 = sbr.rel (!%p575_p1) target bundleno = 270 (0x10e), region = 133 }
 0x112   : >> { %s731_s30 = sshll.u32 %s1244_s29, 3  ;;  %s971_s27 = smov %s1244_s29  }
 0x113   : >> { %s589_s26 = scalar_lea.vmem %s570_s23, %s731_s30 [#allocation3]   ;;  %s590_s25 = scalar_lea.vmem %s572_s24, %s731_s30  }
 0x118 PF: > { %p12_p2 = scmp.ge.s32.totalorder %s1016_s17, 4   ;;  %s1236_s14 = smov %s940_s15 }
 0x119   : > { %s1237_s15 = smov %s1024_s20  ;;  %s1238_s16 = smov %s1016_s17 }
 0x11a   :  { %14 = sbr.rel (!%p12_p2) target bundleno = 5 (0x5), region = 144 }

</bundles_post_ra>
